<compile_context>
chip_gen: v6e
topology: v6e:2x2x1
jax: 0.10.0
libtpu: 0.0.40
codegen_flags: <defaults>
</compile_context>

<pallas_src>
import functools

import jax
import jax.numpy as jnp
from jax.experimental import pallas as pl
from jax.experimental.pallas import tpu as pltpu


def _round_up(x, m):
    return ((x + m - 1) // m) * m


def _conv_tap_kernel(x_ref, w_ref, b_ref, o_ref, *, KH, KW, Wp, L_out):
    """One grid step = one (similarity-matrix m, image n) pair.

    x_ref : (1, 1, Cin, F_pad)      zero-padded image, rows flattened (bf16)
    w_ref : (M, KH*KW, Cout, Cin)   all weights, VMEM-resident (bf16)
    b_ref : (M, Cout, 1)            all biases, VMEM-resident (f32)
    o_ref : (1, 1, Cout, L_out)     flat stride-1 correlation output (f32)

    Tap (kh, kw) is a static lane shift of the flat image by d = kh*Wp + kw
    followed by a single wide (Cout, Cin) @ (Cin, L_out) matmul.  Flat output
    positions that do not map to a valid output pixel contain garbage and are
    cropped by the wrapper.
    """
    m = pl.program_id(0)
    w_m = w_ref[m]                                         # (KH*KW, Cout, Cin)
    acc = jnp.zeros(o_ref.shape[2:], dtype=jnp.float32)    # (Cout, L_out)
    for kh in range(KH):
        for kw in range(KW):
            d = kh * Wp + kw                               # static tap offset
            rhs = x_ref[0, 0, :, pl.ds(d, L_out)]          # (Cin, L_out) bf16
            acc = acc + jnp.dot(w_m[kh * KW + kw], rhs,
                                preferred_element_type=jnp.float32)
    acc = acc + b_ref[m]                                   # bias once, f32
    o_ref[0, 0] = acc.astype(o_ref.dtype)


@functools.partial(jax.jit,
                   static_argnames=("kernel_size", "stride", "pad_h", "pad_w"))
def _forward(x, w_oihw, bias, *, kernel_size, stride, pad_h, pad_w):
    """x: (M, N, Cin, H, W) f32; w_oihw: (M, Cout, Cin, KH, KW); bias: (M, Cout)."""
    M, N, Cin, H, W = x.shape
    Cout = w_oihw.shape[1]
    KH = KW = kernel_size
    S = stride

    # ZeroPad2d + flatten each padded image to one row (glue, O(input) bytes).
    xp = jnp.pad(x, ((0, 0), (0, 0), (0, 0), pad_h, pad_w))
    Hp, Wp = xp.shape[-2:]
    Ho = (Hp - KH) // S + 1
    Wo = (Wp - KW) // S + 1
    Hv = (Ho - 1) * S + 1                 # stride-1 correlation rows needed
    L_out = _round_up(Hv * Wp, 128)       # lane-dense kernel output width
    d_max = (KH - 1) * Wp + (KW - 1)      # largest in-kernel tap shift
    F = Hp * Wp
    F_pad = max(F, d_max + L_out)         # tail margin keeps tap slices in-bounds

    x_flat = xp.reshape(M, N, Cin, F)                           # contiguous
    x_flat = jnp.pad(x_flat, ((0, 0), (0, 0), (0, 0), (0, F_pad - F)))
    x_flat = x_flat.astype(jnp.bfloat16)                        # MXU-native

    # Weights laid out as (M, KH*KW, Cout, Cin): each tap is a ready matmul LHS.
    w_taps = jnp.transpose(w_oihw, (0, 3, 4, 1, 2)).reshape(M, KH * KW, Cout, Cin)
    w_taps = w_taps.astype(jnp.bfloat16)
    b_col = bias.reshape(M, Cout, 1).astype(jnp.float32)

    kernel = functools.partial(_conv_tap_kernel, KH=KH, KW=KW, Wp=Wp, L_out=L_out)

    out_flat = pl.pallas_call(
        kernel,
        out_shape=jax.ShapeDtypeStruct((M, N, Cout, L_out), jnp.float32),
        grid_spec=pltpu.PrefetchScalarGridSpec(
            num_scalar_prefetch=0,
            grid=(M, N),
            in_specs=[
                # One padded flat image per grid step.
                pl.BlockSpec((1, 1, Cin, F_pad), lambda m, n: (m, n, 0, 0)),
                # Weights / biases: full-array blocks, constant index_map ->
                # DMA'd once and kept VMEM-resident across the whole grid.
                pl.BlockSpec((M, KH * KW, Cout, Cin), lambda m, n: (0, 0, 0, 0)),
                pl.BlockSpec((M, Cout, 1), lambda m, n: (0, 0, 0)),
            ],
            out_specs=pl.BlockSpec((1, 1, Cout, L_out),
                                   lambda m, n: (m, n, 0, 0)),
        ),
        compiler_params=pltpu.CompilerParams(
            dimension_semantics=("parallel", "parallel")),
    )(x_flat, w_taps, b_col)

    # Crop the flat stride-1 correlation back to NCHW (output-sized glue only).
    out = out_flat[..., : Hv * Wp].reshape(M, N, Cout, Hv, Wp)
    out = out[..., ::S, : (Wo - 1) * S + 1 : S]       # (M, N, Cout, Ho, Wo)
    return out


class CNNLayerV1Pallas:
    """JAX/Pallas re-implementation of CNNLayerV1.forward."""

    def __init__(self, kernel_size, stride, in_channels, out_channels,
                 num_similarity_matrices, key):
        self.kernel_size = kernel_size
        self.stride = stride
        self.in_channels = in_channels
        self.out_channels = out_channels
        self.num_similarity_matrices = num_similarity_matrices

        p = (kernel_size - 1) // 2
        if kernel_size % 2 == 0:
            # torch.nn.ZeroPad2d((left, right, top, bottom))
            self.pad_w = (p, p + 1)
            self.pad_h = (p, p + 1)
        else:
            self.pad_w = (p, p)
            self.pad_h = (p, p)

        # Deterministic parameter init (shapes match torch.nn.Conv2d:
        # weight (Cout, Cin, KH, KW), bias (Cout,)) for each of the M layers.
        kw_key, kb_key = jax.random.split(key)
        fan_in = in_channels * kernel_size * kernel_size
        bound = 1.0 / (fan_in ** 0.5)
        self.weights_oihw = jax.random.uniform(
            kw_key,
            (num_similarity_matrices, out_channels, in_channels,
             kernel_size, kernel_size),
            minval=-bound, maxval=bound, dtype=jnp.float32)
        self.biases = jax.random.uniform(
            kb_key, (num_similarity_matrices, out_channels),
            minval=-bound, maxval=bound, dtype=jnp.float32)

    def __call__(self, similarity_matrices_list):
        # similarity_matrices_list: list of M arrays, each NCHW (N, Cin, H, W)
        x = jnp.stack(similarity_matrices_list, axis=0)      # (M, N, Cin, H, W)
        out = _forward(x, self.weights_oihw, self.biases,
                       kernel_size=self.kernel_size, stride=self.stride,
                       pad_h=self.pad_h, pad_w=self.pad_w)
        return [out[i] for i in range(self.num_similarity_matrices)]


def _reference(module, similarity_matrices_list):
    """Pure-JAX reference (lax.conv, HIGHEST precision) on the same bf16-rounded
    operands the kernel consumes, so the check isolates kernel structure."""
    results = []
    wq = module.weights_oihw.astype(jnp.bfloat16).astype(jnp.float32)
    for i, x in enumerate(similarity_matrices_list):
        xq = x.astype(jnp.bfloat16).astype(jnp.float32)
        xp = jnp.pad(xq, ((0, 0), (0, 0), module.pad_h, module.pad_w))
        y = jax.lax.conv_general_dilated(
            xp, wq[i],
            window_strides=(module.stride, module.stride),
            padding="VALID",
            dimension_numbers=("NCHW", "OIHW", "NCHW"),
            precision=jax.lax.Precision.HIGHEST)
        y = y + module.biases[i][None, :, None, None]
        results.append(y)
    return results


if __name__ == "__main__":
    key = jax.random.PRNGKey(0)
    k_params, k_data = jax.random.split(key)

    # Small shapes consistent with the module's forward.
    kernel_size = 3
    stride = 1
    in_channels = 4
    out_channels = 8
    num_similarity_matrices = 2
    batch = 2
    H = W = 16

    module = CNNLayerV1Pallas(kernel_size, stride, in_channels, out_channels,
                              num_similarity_matrices, k_params)

    data_keys = jax.random.split(k_data, num_similarity_matrices)
    sim_mats = [
        jax.random.normal(data_keys[i], (batch, in_channels, H, W),
                          dtype=jnp.float32)
        for i in range(num_similarity_matrices)
    ]

    outs = module(sim_mats)
    outs = [jax.block_until_ready(o) for o in outs]

    refs = _reference(module, sim_mats)
    for o, r in zip(outs, refs):
        assert o.shape == r.shape, (o.shape, r.shape)
        assert jnp.allclose(o, r, atol=1e-3, rtol=1e-3)

    print("KERNEL_OK")
</pallas_src>

<mosaic_0001>
module attributes {stable_mosaic.version = 11 : i64} {
  func.func @_conv_tap_kernel(%arg0: i32, %arg1: i32, %arg2: memref<1x1x4x422xbf16, #tpu.memory_space<vmem>>, %arg3: memref<2x9x8x4xbf16, #tpu.memory_space<vmem>>, %arg4: memref<2x8x1xf32, #tpu.memory_space<vmem>>, %arg5: memref<1x1x8x384xf32, #tpu.memory_space<vmem>>) attributes {dimension_semantics = [#tpu.dimension_semantics<parallel>, #tpu.dimension_semantics<parallel>], iteration_bounds = array<i64: 2, 2>, scalar_prefetch = 0 : i64, scratch_operands = 0 : i64, tpu.core_type = #tpu.core_type<tc>, window_params = [{transform_indices = @transform_0, window_bounds = array<i64: 1, 1, 4, 422>}, {pipeline_mode = #tpu.pipeline_mode<synchronous>, transform_indices = @transform_1, window_bounds = array<i64: 2, 9, 8, 4>}, {pipeline_mode = #tpu.pipeline_mode<synchronous>, transform_indices = @transform_2, window_bounds = array<i64: 2, 8, 1>}, {transform_indices = @transform_3, window_bounds = array<i64: 1, 1, 8, 384>}]} {
    %0 = arith.index_cast %arg0 : i32 to index
    %c0 = arith.constant 0 : index
    %c0_0 = arith.constant 0 : index
    %c0_1 = arith.constant 0 : index
    %1 = vector.load %arg3[%0, %c0, %c0_0, %c0_1] : memref<2x9x8x4xbf16, #tpu.memory_space<vmem>>, vector<1x9x8x4xbf16>
    %2 = vector.shape_cast %1 : vector<1x9x8x4xbf16> to vector<9x8x4xbf16>
    %cst = arith.constant 0.000000e+00 : f32
    %3 = vector.broadcast %cst : f32 to vector<8x384xf32>
    %c0_2 = arith.constant 0 : index
    %c0_3 = arith.constant 0 : index
    %c0_4 = arith.constant 0 : index
    %c0_5 = arith.constant 0 : index
    %4 = vector.load %arg2[%c0_2, %c0_3, %c0_4, %c0_5] : memref<1x1x4x422xbf16, #tpu.memory_space<vmem>>, vector<1x1x4x384xbf16>
    %5 = vector.shape_cast %4 : vector<1x1x4x384xbf16> to vector<4x384xbf16>
    %6 = vector.extract_strided_slice %2 {offsets = [0, 0, 0], sizes = [1, 8, 4], strides = [1, 1, 1]} : vector<9x8x4xbf16> to vector<1x8x4xbf16>
    %7 = vector.shape_cast %6 : vector<1x8x4xbf16> to vector<8x4xbf16>
    %cst_6 = arith.constant dense<0.000000e+00> : vector<8x384xf32>
    %8 = tpu.matmul %7, %5, %cst_6 {dimension_numbers = #tpu.dot_dimension_numbers<[1], [0], [0], [1], [0, 0, 1, 1], [], []>} : vector<8x4xbf16>, vector<4x384xbf16>, vector<8x384xf32> -> vector<8x384xf32>
    %9 = arith.addf %3, %8 : vector<8x384xf32>
    %c0_7 = arith.constant 0 : index
    %c0_8 = arith.constant 0 : index
    %c0_9 = arith.constant 0 : index
    %c1 = arith.constant 1 : index
    %10 = vector.load %arg2[%c0_7, %c0_8, %c0_9, %c1] : memref<1x1x4x422xbf16, #tpu.memory_space<vmem>>, vector<1x1x4x384xbf16>
    %11 = vector.shape_cast %10 : vector<1x1x4x384xbf16> to vector<4x384xbf16>
    %12 = vector.extract_strided_slice %2 {offsets = [1, 0, 0], sizes = [1, 8, 4], strides = [1, 1, 1]} : vector<9x8x4xbf16> to vector<1x8x4xbf16>
    %13 = vector.shape_cast %12 : vector<1x8x4xbf16> to vector<8x4xbf16>
    %cst_10 = arith.constant dense<0.000000e+00> : vector<8x384xf32>
    %14 = tpu.matmul %13, %11, %cst_10 {dimension_numbers = #tpu.dot_dimension_numbers<[1], [0], [0], [1], [0, 0, 1, 1], [], []>} : vector<8x4xbf16>, vector<4x384xbf16>, vector<8x384xf32> -> vector<8x384xf32>
    %15 = arith.addf %9, %14 : vector<8x384xf32>
    %c0_11 = arith.constant 0 : index
    %c0_12 = arith.constant 0 : index
    %c0_13 = arith.constant 0 : index
    %c2 = arith.constant 2 : index
    %16 = vector.load %arg2[%c0_11, %c0_12, %c0_13, %c2] : memref<1x1x4x422xbf16, #tpu.memory_space<vmem>>, vector<1x1x4x384xbf16>
    %17 = vector.shape_cast %16 : vector<1x1x4x384xbf16> to vector<4x384xbf16>
    %18 = vector.extract_strided_slice %2 {offsets = [2, 0, 0], sizes = [1, 8, 4], strides = [1, 1, 1]} : vector<9x8x4xbf16> to vector<1x8x4xbf16>
    %19 = vector.shape_cast %18 : vector<1x8x4xbf16> to vector<8x4xbf16>
    %cst_14 = arith.constant dense<0.000000e+00> : vector<8x384xf32>
    %20 = tpu.matmul %19, %17, %cst_14 {dimension_numbers = #tpu.dot_dimension_numbers<[1], [0], [0], [1], [0, 0, 1, 1], [], []>} : vector<8x4xbf16>, vector<4x384xbf16>, vector<8x384xf32> -> vector<8x384xf32>
    %21 = arith.addf %15, %20 : vector<8x384xf32>
    %c0_15 = arith.constant 0 : index
    %c0_16 = arith.constant 0 : index
    %c0_17 = arith.constant 0 : index
    %c18 = arith.constant 18 : index
    %22 = vector.load %arg2[%c0_15, %c0_16, %c0_17, %c18] : memref<1x1x4x422xbf16, #tpu.memory_space<vmem>>, vector<1x1x4x384xbf16>
    %23 = vector.shape_cast %22 : vector<1x1x4x384xbf16> to vector<4x384xbf16>
    %24 = vector.extract_strided_slice %2 {offsets = [3, 0, 0], sizes = [1, 8, 4], strides = [1, 1, 1]} : vector<9x8x4xbf16> to vector<1x8x4xbf16>
    %25 = vector.shape_cast %24 : vector<1x8x4xbf16> to vector<8x4xbf16>
    %cst_18 = arith.constant dense<0.000000e+00> : vector<8x384xf32>
    %26 = tpu.matmul %25, %23, %cst_18 {dimension_numbers = #tpu.dot_dimension_numbers<[1], [0], [0], [1], [0, 0, 1, 1], [], []>} : vector<8x4xbf16>, vector<4x384xbf16>, vector<8x384xf32> -> vector<8x384xf32>
    %27 = arith.addf %21, %26 : vector<8x384xf32>
    %c0_19 = arith.constant 0 : index
    %c0_20 = arith.constant 0 : index
    %c0_21 = arith.constant 0 : index
    %c19 = arith.constant 19 : index
    %28 = vector.load %arg2[%c0_19, %c0_20, %c0_21, %c19] : memref<1x1x4x422xbf16, #tpu.memory_space<vmem>>, vector<1x1x4x384xbf16>
    %29 = vector.shape_cast %28 : vector<1x1x4x384xbf16> to vector<4x384xbf16>
    %30 = vector.extract_strided_slice %2 {offsets = [4, 0, 0], sizes = [1, 8, 4], strides = [1, 1, 1]} : vector<9x8x4xbf16> to vector<1x8x4xbf16>
    %31 = vector.shape_cast %30 : vector<1x8x4xbf16> to vector<8x4xbf16>
    %cst_22 = arith.constant dense<0.000000e+00> : vector<8x384xf32>
    %32 = tpu.matmul %31, %29, %cst_22 {dimension_numbers = #tpu.dot_dimension_numbers<[1], [0], [0], [1], [0, 0, 1, 1], [], []>} : vector<8x4xbf16>, vector<4x384xbf16>, vector<8x384xf32> -> vector<8x384xf32>
    %33 = arith.addf %27, %32 : vector<8x384xf32>
    %c0_23 = arith.constant 0 : index
    %c0_24 = arith.constant 0 : index
    %c0_25 = arith.constant 0 : index
    %c20 = arith.constant 20 : index
    %34 = vector.load %arg2[%c0_23, %c0_24, %c0_25, %c20] : memref<1x1x4x422xbf16, #tpu.memory_space<vmem>>, vector<1x1x4x384xbf16>
    %35 = vector.shape_cast %34 : vector<1x1x4x384xbf16> to vector<4x384xbf16>
    %36 = vector.extract_strided_slice %2 {offsets = [5, 0, 0], sizes = [1, 8, 4], strides = [1, 1, 1]} : vector<9x8x4xbf16> to vector<1x8x4xbf16>
    %37 = vector.shape_cast %36 : vector<1x8x4xbf16> to vector<8x4xbf16>
    %cst_26 = arith.constant dense<0.000000e+00> : vector<8x384xf32>
    %38 = tpu.matmul %37, %35, %cst_26 {dimension_numbers = #tpu.dot_dimension_numbers<[1], [0], [0], [1], [0, 0, 1, 1], [], []>} : vector<8x4xbf16>, vector<4x384xbf16>, vector<8x384xf32> -> vector<8x384xf32>
    %39 = arith.addf %33, %38 : vector<8x384xf32>
    %c0_27 = arith.constant 0 : index
    %c0_28 = arith.constant 0 : index
    %c0_29 = arith.constant 0 : index
    %c36 = arith.constant 36 : index
    %40 = vector.load %arg2[%c0_27, %c0_28, %c0_29, %c36] : memref<1x1x4x422xbf16, #tpu.memory_space<vmem>>, vector<1x1x4x384xbf16>
    %41 = vector.shape_cast %40 : vector<1x1x4x384xbf16> to vector<4x384xbf16>
    %42 = vector.extract_strided_slice %2 {offsets = [6, 0, 0], sizes = [1, 8, 4], strides = [1, 1, 1]} : vector<9x8x4xbf16> to vector<1x8x4xbf16>
    %43 = vector.shape_cast %42 : vector<1x8x4xbf16> to vector<8x4xbf16>
    %cst_30 = arith.constant dense<0.000000e+00> : vector<8x384xf32>
    %44 = tpu.matmul %43, %41, %cst_30 {dimension_numbers = #tpu.dot_dimension_numbers<[1], [0], [0], [1], [0, 0, 1, 1], [], []>} : vector<8x4xbf16>, vector<4x384xbf16>, vector<8x384xf32> -> vector<8x384xf32>
    %45 = arith.addf %39, %44 : vector<8x384xf32>
    %c0_31 = arith.constant 0 : index
    %c0_32 = arith.constant 0 : index
    %c0_33 = arith.constant 0 : index
    %c37 = arith.constant 37 : index
    %46 = vector.load %arg2[%c0_31, %c0_32, %c0_33, %c37] : memref<1x1x4x422xbf16, #tpu.memory_space<vmem>>, vector<1x1x4x384xbf16>
    %47 = vector.shape_cast %46 : vector<1x1x4x384xbf16> to vector<4x384xbf16>
    %48 = vector.extract_strided_slice %2 {offsets = [7, 0, 0], sizes = [1, 8, 4], strides = [1, 1, 1]} : vector<9x8x4xbf16> to vector<1x8x4xbf16>
    %49 = vector.shape_cast %48 : vector<1x8x4xbf16> to vector<8x4xbf16>
    %cst_34 = arith.constant dense<0.000000e+00> : vector<8x384xf32>
    %50 = tpu.matmul %49, %47, %cst_34 {dimension_numbers = #tpu.dot_dimension_numbers<[1], [0], [0], [1], [0, 0, 1, 1], [], []>} : vector<8x4xbf16>, vector<4x384xbf16>, vector<8x384xf32> -> vector<8x384xf32>
    %51 = arith.addf %45, %50 : vector<8x384xf32>
    %c0_35 = arith.constant 0 : index
    %c0_36 = arith.constant 0 : index
    %c0_37 = arith.constant 0 : index
    %c38 = arith.constant 38 : index
    %52 = vector.load %arg2[%c0_35, %c0_36, %c0_37, %c38] : memref<1x1x4x422xbf16, #tpu.memory_space<vmem>>, vector<1x1x4x384xbf16>
    %53 = vector.shape_cast %52 : vector<1x1x4x384xbf16> to vector<4x384xbf16>
    %54 = vector.extract_strided_slice %2 {offsets = [8, 0, 0], sizes = [1, 8, 4], strides = [1, 1, 1]} : vector<9x8x4xbf16> to vector<1x8x4xbf16>
    %55 = vector.shape_cast %54 : vector<1x8x4xbf16> to vector<8x4xbf16>
    %cst_38 = arith.constant dense<0.000000e+00> : vector<8x384xf32>
    %56 = tpu.matmul %55, %53, %cst_38 {dimension_numbers = #tpu.dot_dimension_numbers<[1], [0], [0], [1], [0, 0, 1, 1], [], []>} : vector<8x4xbf16>, vector<4x384xbf16>, vector<8x384xf32> -> vector<8x384xf32>
    %57 = arith.addf %51, %56 : vector<8x384xf32>
    %58 = arith.index_cast %arg0 : i32 to index
    %c0_39 = arith.constant 0 : index
    %c0_40 = arith.constant 0 : index
    %59 = vector.load %arg4[%58, %c0_39, %c0_40] : memref<2x8x1xf32, #tpu.memory_space<vmem>>, vector<1x8x1xf32>
    %60 = vector.shape_cast %59 : vector<1x8x1xf32> to vector<8x1xf32>
    %61 = vector.broadcast %60 : vector<8x1xf32> to vector<8x384xf32>
    %62 = arith.addf %57, %61 : vector<8x384xf32>
    %c0_41 = arith.constant 0 : index
    %c0_42 = arith.constant 0 : index
    %c0_43 = arith.constant 0 : index
    %c0_44 = arith.constant 0 : index
    %63 = vector.load %arg5[%c0_41, %c0_42, %c0_43, %c0_44] : memref<1x1x8x384xf32, #tpu.memory_space<vmem>>, vector<1x1x8x384xf32>
    %64 = vector.shape_cast %63 : vector<1x1x8x384xf32> to vector<8x384xf32>
    %65 = vector.shape_cast %62 : vector<8x384xf32> to vector<1x1x8x384xf32>
    tpu.vector_store %arg5[%c0_41, %c0_42, %c0_43, %c0_44], %65 {strides = array<i32>} : memref<1x1x8x384xf32, #tpu.memory_space<vmem>>, vector<1x1x8x384xf32>,
    return
  }
  func.func @transform_0(%arg0: i32, %arg1: i32) -> (i32, i32, i32, i32) {
    %c0_i32 = arith.constant 0 : i32
    %c0_i32_0 = arith.constant 0 : i32
    %c0_i32_1 = arith.constant 0 : i32
    return %arg0, %arg1, %c0_i32, %c0_i32_0 : i32, i32, i32, i32
  }
  func.func @transform_1(%arg0: i32, %arg1: i32) -> (i32, i32, i32, i32) {
    %c0_i32 = arith.constant 0 : i32
    %c0_i32_0 = arith.constant 0 : i32
    %c0_i32_1 = arith.constant 0 : i32
    %c0_i32_2 = arith.constant 0 : i32
    %c0_i32_3 = arith.constant 0 : i32
    return %c0_i32, %c0_i32_0, %c0_i32_1, %c0_i32_2 : i32, i32, i32, i32
  }
  func.func @transform_2(%arg0: i32, %arg1: i32) -> (i32, i32, i32) {
    %c0_i32 = arith.constant 0 : i32
    %c0_i32_0 = arith.constant 0 : i32
    %c0_i32_1 = arith.constant 0 : i32
    %c0_i32_2 = arith.constant 0 : i32
    return %c0_i32, %c0_i32_0, %c0_i32_1 : i32, i32, i32
  }
  func.func @transform_3(%arg0: i32, %arg1: i32) -> (i32, i32, i32, i32) {
    %c0_i32 = arith.constant 0 : i32
    %c0_i32_0 = arith.constant 0 : i32
    %c0_i32_1 = arith.constant 0 : i32
    return %arg0, %arg1, %c0_i32, %c0_i32_0 : i32, i32, i32, i32
  }
}

</mosaic_0001>

<bundles_post_ra>
// kernel: _forward.1
= control target key start
LH: loop header
LB: loop body
LE: loop exit
PB: predicated region body
PF: predicated region fallthrough
CT: control target
= control target key end

     0   :  { %s1701_s12 = smov 0   ;;  %s1703_s13 = smov 0   ;;  %s1873_s0 = inlined_call_operand.vmem [shape: bf16[2,2,4,422], index: 0, kind: input, shape index: {}]   ;;  %s1874_s1 = inlined_call_operand.vmem [shape: bf16[2,9,8,4], index: 1, kind: input, shape index: {}]   ;;  %s1875_s2 = inlined_call_operand.vmem [shape: f32[2,8,1], index: 2, kind: input, shape index: {}]   ;;  %s1876_s3 = inlined_call_operand.vmem [shape: f32[2,2,8,384], index: 3, kind: output, shape index: {}]  }
   0x1   :  { %s1705_s14 = smov 0   ;;  %s1707_s15 = smov 0  }
   0x2   :  { %s1709_s16 = smov 0  }
   0x3 LB: > { %s22_s17 = sadd.s32 1, %s1659_s14  ;;  %s25_s18 = sadd.s32 1, %s1663_s15  ;;  %s1667_s16 = sphi %s1709_s16, %s13_s16   ;;  %s1663_s15 = sphi %s1707_s15, %s1880_s15   ;;  %s1659_s14 = sphi %s1705_s14, %s1879_s14   ;;  %s1655_s13 = sphi %s1703_s13, %s1878_s13   ;;  %s1651_s12 = sphi %s1701_s12, %s1877_s12  }
   0x4   : > { %p23_p0 = scmp.ge.s32.totalorder %s22_s17, 2  ;;  %p1463_p1 = scmp.ge.s32.totalorder %s1667_s16, 1 }
   0x5   : > { %p157_p2 = scmp.lt.s32.totalorder %s1667_s16, 5 }
   0x6   : > { %s1882_s17 = smov (%p23_p0, %s22_s17), 0  ;;  %s1884_s18 = smov (!%p23_p0, %s25_s18), %s1663_s15 }
   0x7   : > { %p158_p3 = pnand %p1463_p1, %p157_p2  ;;  %p27_p4 = scmp.ge.s32.totalorder %s1884_s18, 2 }
   0x8   : > { %p189_p5 = scmp.lt.s32.totalorder (!%p158_p3), %s1655_s13, 1  ;;  %p191_p6 = scmp.lt.s32.totalorder (!%p158_p3), %s1651_s12, 1 }
   0x9   : > { %s1886_s18 = smov (%p27_p4, %s1884_s18), 0  ;;  %161 = sbr.rel (%p158_p3) target bundleno = 412 (0x19c), region = 32 }
   0xa   : > { %s1673_s27 = smov (!%p158_p3), 127   ;;  %s1674_s28 = smov (!%p158_p3), 126  }
   0xb   : > { %s1675_s29 = smov (!%p158_p3), 110   ;;  %s1676_s30 = smov (!%p158_p3), 109  }
   0xc   : > { %s1677_s4 = smov (!%p158_p3), 108   ;;  %s1678_s5 = smov (!%p158_p3), 92  }
   0xd   : > { %s1679_s6 = smov (!%p158_p3), 91   ;;  %s1680_s7 = smov (!%p158_p3), 90  }
   0xe   : > { %v227_v0 = vlaneseq  ;;  %v1669_v1 = vmov 1983009808   ;;  %s1735_s19 = scalar_select %p189_p5, %s1655_s13, 1  ;;  %v1670_v6 = vmov 0.0   ;;  %v1671_v7 = vmov 0  }
   0xf   : > { %v225_v2 = vunpack.c.l.s4 %v1669_v1  ;;  %s1888_s12 = smov (!%p191_p6, %s1651_s12), 1  ;;  %1518 = vmatprep.subr.bf16.mxu1 %v1670_v6  ;;  %298 = vmatprep.mubr.bf16.mxu0 %v1671_v7  ;;  %vm1672_vm0 = vmmov 0   ;;  %s1496_s8 = sshll.u32 %s1655_s13, 3  ;;  %vm248_vm1 = vcmask 1039360   ;;  %vm256_vm2 = vcmask 1041408  }
  0x10   : > { %v228_v3 = vshrl.u32 %v227_v0, 7  ;;  %s1465_s20 = sshll.u32 %s1735_s19, 3  ;;  %s1464_s21 = sshll.u32 %s1888_s12, 2  ;;  %1626 = vset.pattern.permute.xlu0 %v1671_v7  ;;  %1520 = vmatprep.mubr.msk.bf16.mxu1 %vm1672_vm0, %v1670_v6  ;;  %vm252_vm3 = vcmask 31744   ;;  %vm484_vm4 = vcmask 1031168   ;;  %vm611_vm5 = vcmask 900096  }
  0x11   : > { %v226_v4 = vunpack.c.0.s8 %v225_v2  ;;  %s195_s22 = sadd.s32 %s1465_s20, %s1464_s21  ;;  %s1347_s11 = scalar_lea.vmem %s1875_s2, %s1496_s8  ;;  %vm738_vm6 = vcmask 891904   ;;  %vm865_vm7 = vcmask 883712   ;;  %vm992_vm8 = vcmask 752640  }
  0x12   : > { %s1466_s23 = sshll.u32 %s195_s22, 1  ;;  %v1348_v18 = vld [vmem:[%s1347_s11] sm:$0xff]  ;;  %s1499_s20 = smul.u32 36, %s1655_s13  ;;  %vm1119_vm9 = vcmask 744448   ;;  %vm1246_vm10 = vcmask 736256  }
  0x13   : > { %v229_v5 = vsub.s32 %v226_v4, %v228_v3  ;;  %s197_s26 = scalar_lea.vmem %s1873_s0, %s1466_s23  ;;  %s1572_s13 = smul.u32 3, %s1888_s12 }
  0x14   : > { %v221_v8 = vld [vmem:[%s197_s26] sm:$0xff]  ;;  %s1761_s23 = scalar_lea.vmem %s1874_s1, %s1499_s20  ;;  %s1573_s24 = smul.u32 6, %s1735_s19 }
  0x15   : > { %v220_v9 = vld [vmem:[%s197_s26] sm:$0x3f]  ;;  %v230_v10 = vrot.slane %v221_v8, %v229_v5  ;;  %v223_v11 = vcombine.high %v221_v8, %v221_v8  ;;  %v213_v49 = vld [vmem:[%s1761_s23 + $0x8] sm:$0xf]  ;;  %v214_v59 = vld [vmem:[%s1761_s23 + $0xc] sm:$0xf] }
  0x16   : > { %v1749_v12 = vrot.slane %v220_v9, %v229_v5  ;;  %v348_v13 = vcombine.high %v220_v9, %v220_v9  ;;  %v212_v28 = vld [vmem:[%s1761_s23 + $0x4] sm:$0xf]  ;;  %v211_v39 = vld [vmem:[%s1761_s23] sm:$0xf]  ;;  %s204_s25 = sadd.s32 %s1573_s24, %s1572_s13 }
  0x17   : > { %240 = vrot.lane.b32.xlu0 %v230_v10, %s1673_s27  ;;  %v238_v14 = vcombine.high %v230_v10, %v230_v10  ;;  %v237_v15 = vrot.slane %v223_v11, %v229_v5  ;;  %s1467_s12 = sshll.u32 %s204_s25, 3 }
  0x18   : > { %v1751_v16 = vrot.slane %v348_v13, %v229_v5  ;;  %v363_v22 = vcombine.high %v1749_v12, %v1749_v12  ;;  %v368_v31 = vsel %vm256_vm2, %v1749_v12, 0  ;;  %v215_v5 = vld [vmem:[%s1761_s23 + $0x10] sm:$0xf] }
  0x19   : > { %244 = vrot.lane.b32.xlu1 %v237_v15, %s1673_s27  ;;  %v239_v17 = vcombine.high %v237_v15, %v237_v15 }
  0x1a   : > { %v374_v33 = vsel %vm256_vm2, %v1751_v16, 0 }
  0x1b   : > { %242 = vrot.lane.b32.xlu0 %v238_v14, %s1673_s27 }
  0x1d   : > { %246 = vrot.lane.b32.xlu1 %v239_v17, %s1673_s27  ;;  %s206_s27 = scalar_lea.vmem %s1876_s3, %s1467_s12 }
  0x1f   : > { %476 = vrot.lane.b32.xlu0 %v230_v10, %s1674_s28 }
  0x21   : > { %478 = vrot.lane.b32.xlu1 %v238_v14, %s1674_s28 }
  0x23   : > { %480 = vrot.lane.b32.xlu0 %v237_v15, %s1674_s28 }
  0x25   : > { %482 = vrot.lane.b32.xlu1 %v239_v17, %s1674_s28 }
  0x27   : > { %603 = vrot.lane.b32.xlu0 %v230_v10, %s1675_s29 }
  0x29   : > { %605 = vrot.lane.b32.xlu1 %v238_v14, %s1675_s29 }
  0x2b   : > { %607 = vrot.lane.b32.xlu0 %v237_v15, %s1675_s29 }
  0x2d   : > { %609 = vrot.lane.b32.xlu1 %v239_v17, %s1675_s29 }
  0x2f   : > { %730 = vrot.lane.b32.xlu0 %v230_v10, %s1676_s30 }
  0x31   : > { %732 = vrot.lane.b32.xlu1 %v238_v14, %s1676_s30 }
  0x33   : > { %734 = vrot.lane.b32.xlu0 %v237_v15, %s1676_s30 }
  0x35   : > { %736 = vrot.lane.b32.xlu1 %v239_v17, %s1676_s30 }
  0x37   : > { %857 = vrot.lane.b32.xlu0 %v230_v10, %s1677_s4 }
  0x39   : > { %859 = vrot.lane.b32.xlu1 %v238_v14, %s1677_s4 }
  0x3b   : > { %861 = vrot.lane.b32.xlu0 %v237_v15, %s1677_s4 }
  0x3d   : > { %863 = vrot.lane.b32.xlu1 %v239_v17, %s1677_s4 }
  0x3f   : > { %984 = vrot.lane.b32.xlu0 %v230_v10, %s1678_s5 }
  0x41   : > { %986 = vrot.lane.b32.xlu1 %v238_v14, %s1678_s5 }
  0x43   : > { %988 = vrot.lane.b32.xlu0 %v237_v15, %s1678_s5 }
  0x45   : > { %990 = vrot.lane.b32.xlu1 %v239_v17, %s1678_s5 }
  0x47   : > { %1111 = vrot.lane.b32.xlu0 %v230_v10, %s1679_s6 }
  0x49   : > { %1113 = vrot.lane.b32.xlu1 %v238_v14, %s1679_s6 }
  0x4b   : > { %1115 = vrot.lane.b32.xlu0 %v237_v15, %s1679_s6 }
  0x4d   : > { %1117 = vrot.lane.b32.xlu1 %v239_v17, %s1679_s6 }
  0x4f   : > { %1238 = vrot.lane.b32.xlu0 %v230_v10, %s1680_s7 }
  0x51   : > { %1240 = vrot.lane.b32.xlu1 %v238_v14, %s1680_s7 }
  0x53   : > { %1242 = vrot.lane.b32.xlu0 %v237_v15, %s1680_s7 }
  0x55   : > { %1244 = vrot.lane.b32.xlu1 %v239_v17, %s1680_s7  ;;  %v216_v17 = vld [vmem:[%s1761_s23 + $0x14] sm:$0xf] }
  0x57   : > { %1351 = vperm.xlu0 %1626, %v1348_v18  }
  0x89   : > { %v241_v19 = vpop.permute.xlu0 %240 }
  0x8b   : > { %v245_v20 = vpop.permute.xlu1 %244 }
  0x8d   : > { %v243_v21 = vpop.permute.xlu0 %242 }
  0x8e   : > { %v250_v23 = vsel %vm248_vm1, %v243_v21, %v245_v20  ;;  %v249_v24 = vsel %vm248_vm1, %v241_v19, %v243_v21 }
  0x8f   : > { %1469 = vmatprep.subr.msk.bf16.mxu0 %vm256_vm2, %v250_v23  ;;  %v247_v25 = vpop.permute.xlu1 %246  ;;  %v258_v26 = vsel %vm256_vm2, %v249_v24, 0 }
  0x90   : > { %281 = vmatpush1.bf16.msra.mxu0 %v258_v26  ;;  %v251_v27 = vsel %vm248_vm1, %v245_v20, %v247_v25 }
  0x91   : > { %v264_v29 = vsel %vm256_vm2, %v251_v27, 0  ;;  %v477_v30 = vpop.permute.xlu0 %476  ;;  %1472 = vmatprep.subr.msk.bf16.mxu0 %vm256_vm2, %v363_v22  ;;  %v217_v27 = vld [vmem:[%s1761_s23 + $0x18] sm:$0xf] }
  0x92   : > { %1519 = vmatpush3.bf16.msra.mxu1 %v264_v29 }
  0x93   : > { %1470 = vmatmul.mubr.msk.bf16.vlgmr.msra.gmra.mxu0 %vm252_vm3, %v212_v28  ;;  %1524 = vmatprep.subr.bf16.mxu1 %v1670_v6  ;;  %v479_v32 = vpop.permute.xlu1 %478 }
  0x94   : > { %391 = vmatpush1.bf16.msra.mxu0 %v368_v31  ;;  %408 = vmatprep.mubr.bf16.mxu0 %v1671_v7  ;;  %v485_v35 = vsel %vm484_vm4, %v477_v30, %v479_v32 }
  0x95   : > { %1521 = vmatmul.mubr.msk.bf16.vlgmr.msra.gmra.mxu1 %vm252_vm3, %v212_v28  ;;  %v481_v34 = vpop.permute.xlu0 %480  ;;  %v492_v40 = vsel %vm256_vm2, %v485_v35, 0 }
  0x96   : > { %1525 = vmatpush3.bf16.msra.mxu1 %v374_v33  ;;  %v486_v36 = vsel %vm484_vm4, %v479_v32, %v481_v34  ;;  %1526 = vmatprep.mubr.msk.bf16.mxu1 %vm1672_vm0, %v1670_v6 }
  0x97   : > { %1475 = vmatprep.subr.msk.bf16.mxu0 %vm256_vm2, %v486_v36  ;;  %v483_v37 = vpop.permute.xlu1 %482  ;;  %1530 = vmatprep.subr.bf16.mxu1 %v1670_v6 }
  0x98   : > { %v487_v38 = vsel %vm484_vm4, %v481_v34, %v483_v37  ;;  %v218_v37 = vld [vmem:[%s1761_s23 + $0x1c] sm:$0xf] }
  0x99   : > { %v604_v41 = vpop.permute.xlu0 %603  ;;  %v498_v42 = vsel %vm256_vm2, %v487_v38, 0 }
  0x9b   : > { %1473 = vmatmul.mubr.msk.bf16.vlgmr.msra.gmra.mxu0 %vm252_vm3, %v211_v39  ;;  %v606_v43 = vpop.permute.xlu1 %605 }
  0x9c   : > { %515 = vmatpush1.bf16.msra.mxu0 %v492_v40  ;;  %532 = vmatprep.mubr.bf16.mxu0 %v1671_v7  ;;  %v612_v45 = vsel %vm611_vm5, %v604_v41, %v606_v43  ;;  %v219_v40 = vld [vmem:[%s1761_s23 + $0x20] sm:$0xf] }
  0x9d   : > { %1527 = vmatmul.mubr.msk.bf16.vlgmr.msra.gmra.mxu1 %vm252_vm3, %v211_v39  ;;  %v608_v44 = vpop.permute.xlu0 %607  ;;  %v619_v50 = vsel %vm256_vm2, %v612_v45, 0 }
  0x9e   : > { %1531 = vmatpush3.bf16.msra.mxu1 %v498_v42  ;;  %v613_v46 = vsel %vm611_vm5, %v606_v43, %v608_v44  ;;  %1532 = vmatprep.mubr.msk.bf16.mxu1 %vm1672_vm0, %v1670_v6 }
  0x9f   : > { %1478 = vmatprep.subr.msk.bf16.mxu0 %vm256_vm2, %v613_v46  ;;  %v610_v47 = vpop.permute.xlu1 %609  ;;  %1536 = vmatprep.subr.bf16.mxu1 %v1670_v6 }
  0xa0   : > { %v614_v48 = vsel %vm611_vm5, %v608_v44, %v610_v47 }
  0xa1   : > { %v731_v51 = vpop.permute.xlu0 %730  ;;  %v625_v52 = vsel %vm256_vm2, %v614_v48, 0 }
  0xa3   : > { %1476 = vmatmul.mubr.msk.bf16.vlgmr.msra.gmra.mxu0 %vm252_vm3, %v213_v49  ;;  %v733_v53 = vpop.permute.xlu1 %732 }
  0xa4   : > { %642 = vmatpush1.bf16.msra.mxu0 %v619_v50  ;;  %659 = vmatprep.mubr.bf16.mxu0 %v1671_v7  ;;  %v739_v55 = vsel %vm738_vm6, %v731_v51, %v733_v53 }
  0xa5   : > { %1533 = vmatmul.mubr.msk.bf16.vlgmr.msra.gmra.mxu1 %vm252_vm3, %v213_v49  ;;  %v735_v54 = vpop.permute.xlu0 %734  ;;  %v746_v60 = vsel %vm256_vm2, %v739_v55, 0 }
  0xa6   : > { %1537 = vmatpush3.bf16.msra.mxu1 %v625_v52  ;;  %v740_v56 = vsel %vm738_vm6, %v733_v53, %v735_v54  ;;  %1538 = vmatprep.mubr.msk.bf16.mxu1 %vm1672_vm0, %v1670_v6 }
  0xa7   : > { %1481 = vmatprep.subr.msk.bf16.mxu0 %vm256_vm2, %v740_v56  ;;  %v737_v57 = vpop.permute.xlu1 %736  ;;  %1542 = vmatprep.subr.bf16.mxu1 %v1670_v6 }
  0xa8   : > { %v741_v58 = vsel %vm738_vm6, %v735_v54, %v737_v57 }
  0xa9   : > { %v858_v61 = vpop.permute.xlu0 %857  ;;  %v752_v62 = vsel %vm256_vm2, %v741_v58, 0 }
  0xab   : > { %1479 = vmatmul.mubr.msk.bf16.vlgmr.msra.gmra.mxu0 %vm252_vm3, %v214_v59  ;;  %v860_v63 = vpop.permute.xlu1 %859 }
  0xac   : > { %769 = vmatpush1.bf16.msra.mxu0 %v746_v60  ;;  %786 = vmatprep.mubr.bf16.mxu0 %v1671_v7  ;;  %v866_v1 = vsel %vm865_vm7, %v858_v61, %v860_v63 }
  0xad   : > { %1539 = vmatmul.mubr.msk.bf16.vlgmr.msra.gmra.mxu1 %vm252_vm3, %v214_v59  ;;  %v862_v0 = vpop.permute.xlu0 %861  ;;  %v873_v8 = vsel %vm256_vm2, %v866_v1, 0 }
  0xae   : > { %1543 = vmatpush3.bf16.msra.mxu1 %v752_v62  ;;  %v867_v2 = vsel %vm865_vm7, %v860_v63, %v862_v0  ;;  %1544 = vmatprep.mubr.msk.bf16.mxu1 %vm1672_vm0, %v1670_v6 }
  0xaf   : > { %1484 = vmatprep.subr.msk.bf16.mxu0 %vm256_vm2, %v867_v2  ;;  %v864_v3 = vpop.permute.xlu1 %863  ;;  %1548 = vmatprep.subr.bf16.mxu1 %v1670_v6 }
  0xb0   : > { %v868_v4 = vsel %vm865_vm7, %v862_v0, %v864_v3 }
  0xb1   : > { %v985_v9 = vpop.permute.xlu0 %984  ;;  %v879_v10 = vsel %vm256_vm2, %v868_v4, 0 }
  0xb3   : > { %1482 = vmatmul.mubr.msk.bf16.vlgmr.msra.gmra.mxu0 %vm252_vm3, %v215_v5  ;;  %v987_v11 = vpop.permute.xlu1 %986 }
  0xb4   : > { %896 = vmatpush1.bf16.msra.mxu0 %v873_v8  ;;  %913 = vmatprep.mubr.bf16.mxu0 %v1671_v7  ;;  %v993_v13 = vsel %vm992_vm8, %v985_v9, %v987_v11 }
  0xb5   : > { %1545 = vmatmul.mubr.msk.bf16.vlgmr.msra.gmra.mxu1 %vm252_vm3, %v215_v5  ;;  %v989_v12 = vpop.permute.xlu0 %988  ;;  %v1000_v18 = vsel %vm256_vm2, %v993_v13, 0 }
  0xb6   : > { %1549 = vmatpush3.bf16.msra.mxu1 %v879_v10  ;;  %v994_v14 = vsel %vm992_vm8, %v987_v11, %v989_v12  ;;  %1550 = vmatprep.mubr.msk.bf16.mxu1 %vm1672_vm0, %v1670_v6 }
  0xb7   : > { %1487 = vmatprep.subr.msk.bf16.mxu0 %vm256_vm2, %v994_v14  ;;  %v991_v15 = vpop.permute.xlu1 %990  ;;  %1554 = vmatprep.subr.bf16.mxu1 %v1670_v6 }
  0xb8   : > { %v995_v16 = vsel %vm992_vm8, %v989_v12, %v991_v15 }
  0xb9   : > { %v1112_v19 = vpop.permute.xlu0 %1111  ;;  %v1006_v20 = vsel %vm256_vm2, %v995_v16, 0 }
  0xbb   : > { %1485 = vmatmul.mubr.msk.bf16.vlgmr.msra.gmra.mxu0 %vm252_vm3, %v216_v17  ;;  %v1114_v21 = vpop.permute.xlu1 %1113 }
  0xbc   : > { %1023 = vmatpush1.bf16.msra.mxu0 %v1000_v18  ;;  %1040 = vmatprep.mubr.bf16.mxu0 %v1671_v7  ;;  %v1120_v23 = vsel %vm1119_vm9, %v1112_v19, %v1114_v21 }
  0xbd   : > { %1551 = vmatmul.mubr.msk.bf16.vlgmr.msra.gmra.mxu1 %vm252_vm3, %v216_v17  ;;  %v1116_v22 = vpop.permute.xlu0 %1115  ;;  %v1127_v28 = vsel %vm256_vm2, %v1120_v23, 0 }
  0xbe   : > { %1555 = vmatpush3.bf16.msra.mxu1 %v1006_v20  ;;  %v1121_v24 = vsel %vm1119_vm9, %v1114_v21, %v1116_v22  ;;  %1556 = vmatprep.mubr.msk.bf16.mxu1 %vm1672_vm0, %v1670_v6 }
  0xbf   : > { %1490 = vmatprep.subr.msk.bf16.mxu0 %vm256_vm2, %v1121_v24  ;;  %v1118_v25 = vpop.permute.xlu1 %1117  ;;  %1560 = vmatprep.subr.bf16.mxu1 %v1670_v6 }
  0xc0   : > { %v1122_v26 = vsel %vm1119_vm9, %v1116_v22, %v1118_v25 }
  0xc1   : > { %v1239_v29 = vpop.permute.xlu0 %1238  ;;  %v1133_v30 = vsel %vm256_vm2, %v1122_v26, 0 }
  0xc3   : > { %1488 = vmatmul.mubr.msk.bf16.vlgmr.msra.gmra.mxu0 %vm252_vm3, %v217_v27  ;;  %v1241_v31 = vpop.permute.xlu1 %1240 }
  0xc4   : > { %1150 = vmatpush1.bf16.msra.mxu0 %v1127_v28  ;;  %1167 = vmatprep.mubr.bf16.mxu0 %v1671_v7  ;;  %v1247_v33 = vsel %vm1246_vm10, %v1239_v29, %v1241_v31 }
  0xc5   : > { %1557 = vmatmul.mubr.msk.bf16.vlgmr.msra.gmra.mxu1 %vm252_vm3, %v217_v27  ;;  %v1243_v32 = vpop.permute.xlu0 %1242  ;;  %v1254_v38 = vsel %vm256_vm2, %v1247_v33, 0 }
  0xc6   : > { %1561 = vmatpush3.bf16.msra.mxu1 %v1133_v30  ;;  %v1248_v34 = vsel %vm1246_vm10, %v1241_v31, %v1243_v32  ;;  %1562 = vmatprep.mubr.msk.bf16.mxu1 %vm1672_vm0, %v1670_v6 }
  0xc7   : > { %1493 = vmatprep.subr.msk.bf16.mxu0 %vm256_vm2, %v1248_v34  ;;  %v1245_v35 = vpop.permute.xlu1 %1244  ;;  %1566 = vmatprep.subr.bf16.mxu1 %v1670_v6 }
  0xc8   : > { %v1249_v36 = vsel %vm1246_vm10, %v1243_v32, %v1245_v35 }
  0xc9   : > { %v1260_v39 = vsel %vm256_vm2, %v1249_v36, 0 }
  0xcb   : > { %1491 = vmatmul.mubr.msk.bf16.vlgmr.msra.gmra.mxu0 %vm252_vm3, %v218_v37 }
  0xcc   : > { %1277 = vmatpush1.bf16.msra.mxu0 %v1254_v38  ;;  %1294 = vmatprep.mubr.bf16.mxu0 %v1671_v7 }
  0xcd   : > { %1563 = vmatmul.mubr.msk.bf16.vlgmr.msra.gmra.mxu1 %vm252_vm3, %v218_v37 }
  0xce   : > { %1567 = vmatpush3.bf16.msra.mxu1 %v1260_v39  ;;  %1568 = vmatprep.mubr.msk.bf16.mxu1 %vm1672_vm0, %v1670_v6 }
  0xd3   : > { %1494 = vmatmul.mubr.msk.bf16.vlgmr.msra.gmra.mxu0 %vm252_vm3, %v219_v40 }
  0xd5   : > { %1569 = vmatmul.mubr.msk.bf16.vlgmr.msra.gmra.mxu1 %vm252_vm3, %v219_v40 }
 0x153   : > { %v300_v41 = vpop.f32.mrf.mxu0 }
 0x155   : > { %v302_v42 = vpop.f32.mrf.mxu0  ;;  %v341_v43 = vpop.f32.mrf.mxu1 }
 0x157   : > { %v304_v44 = vpop.f32.mrf.mxu0  ;;  %v1522_v45 = vpop.f32.mrf.mxu1 }
 0x159   : > { %v305_v46 = vpop.f32.mrf.mxu0  ;;  %v344_v47 = vpop.f32.mrf.mxu1 }
 0x15b   : > { %v1523_v48 = vpop.f32.mrf.mxu1  ;;  %v410_v7 = vpop.f32.mrf.mxu0 }
 0x15c   : > { %v411_v28 = vadd.f32 %v410_v7, %v300_v41 }
 0x15d   : > { %v412_v49 = vpop.f32.mrf.mxu0  ;;  %v451_v50 = vpop.f32.mrf.mxu1 }
 0x15e   : > { %v413_v31 = vadd.f32 %v412_v49, %v302_v42  ;;  %v452_v32 = vadd.f32 %v451_v50, %v341_v43 }
 0x15f   : > { %v414_v51 = vpop.f32.mrf.mxu0  ;;  %v1528_v52 = vpop.f32.mrf.mxu1 }
 0x161   : > { %v415_v53 = vpop.f32.mrf.mxu0  ;;  %v454_v6 = vpop.f32.mrf.mxu1 }
 0x163   : > { %v1529_v54 = vpop.f32.mrf.mxu1  ;;  %v534_v55 = vpop.f32.mrf.mxu0 }
 0x164   : > { %v581_v33 = vadd.f32 %v534_v55, %v411_v28 }
 0x165   : > { %v536_v56 = vpop.f32.mrf.mxu0  ;;  %v575_v57 = vpop.f32.mrf.mxu1 }
 0x166   : > { %v582_v36 = vadd.f32 %v536_v56, %v413_v31  ;;  %v583_v37 = vadd.f32 %v575_v57, %v452_v32  ;;  %v1352_v57 = vpop.permute.xlu0 %1351 }
 0x167   : > { %v538_v58 = vpop.f32.mrf.mxu0  ;;  %v1534_v59 = vpop.f32.mrf.mxu1 }
 0x169   : > { %v539_v60 = vpop.f32.mrf.mxu0  ;;  %v578_v61 = vpop.f32.mrf.mxu1 }
 0x16b   : > { %v1535_v62 = vpop.f32.mrf.mxu1  ;;  %v661_v63 = vpop.f32.mrf.mxu0 }
 0x16c   : > { %v708_v38 = vadd.f32 %v661_v63, %v581_v33 }
 0x16d   : > { %v663_v0 = vpop.f32.mrf.mxu0  ;;  %v702_v1 = vpop.f32.mrf.mxu1 }
 0x16e   : > { %v709_v44 = vadd.f32 %v663_v0, %v582_v36  ;;  %v710_v45 = vadd.f32 %v702_v1, %v583_v37 }
 0x16f   : > { %v665_v2 = vpop.f32.mrf.mxu0  ;;  %v1540_v3 = vpop.f32.mrf.mxu1 }
 0x171   : > { %v666_v4 = vpop.f32.mrf.mxu0  ;;  %v705_v5 = vpop.f32.mrf.mxu1 }
 0x173   : > { %v1541_v8 = vpop.f32.mrf.mxu1  ;;  %v788_v9 = vpop.f32.mrf.mxu0 }
 0x174   : > { %v835_v46 = vadd.f32 %v788_v9, %v708_v38 }
 0x175   : > { %v790_v10 = vpop.f32.mrf.mxu0  ;;  %v829_v11 = vpop.f32.mrf.mxu1 }
 0x176   : > { %v836_v41 = vadd.f32 %v790_v10, %v709_v44  ;;  %v837_v7 = vadd.f32 %v829_v11, %v710_v45 }
 0x177   : > { %v792_v12 = vpop.f32.mrf.mxu0  ;;  %v1546_v13 = vpop.f32.mrf.mxu1 }
 0x179   : > { %v793_v14 = vpop.f32.mrf.mxu0  ;;  %v832_v15 = vpop.f32.mrf.mxu1 }
 0x17b   : > { %v1547_v16 = vpop.f32.mrf.mxu1  ;;  %v915_v17 = vpop.f32.mrf.mxu0 }
 0x17c   : > { %v962_v51 = vadd.f32 %v915_v17, %v835_v46 }
 0x17d   : > { %v917_v18 = vpop.f32.mrf.mxu0  ;;  %v956_v19 = vpop.f32.mrf.mxu1 }
 0x17e   : > { %v963_v49 = vadd.f32 %v917_v18, %v836_v41  ;;  %v964_v50 = vadd.f32 %v956_v19, %v837_v7 }
 0x17f   : > { %v919_v20 = vpop.f32.mrf.mxu0  ;;  %v1552_v21 = vpop.f32.mrf.mxu1 }
 0x181   : > { %v920_v22 = vpop.f32.mrf.mxu0  ;;  %v959_v23 = vpop.f32.mrf.mxu1 }
 0x183   : > { %v1553_v24 = vpop.f32.mrf.mxu1  ;;  %v1042_v25 = vpop.f32.mrf.mxu0 }
 0x184   : > { %v1089_v52 = vadd.f32 %v1042_v25, %v962_v51 }
 0x185   : > { %v1044_v26 = vpop.f32.mrf.mxu0  ;;  %v1083_v27 = vpop.f32.mrf.mxu1 }
 0x186   : > { %v1090_v54 = vadd.f32 %v1044_v26, %v963_v49  ;;  %v1091_v55 = vadd.f32 %v1083_v27, %v964_v50 }
 0x187   : > { %v1046_v29 = vpop.f32.mrf.mxu0  ;;  %v1558_v30 = vpop.f32.mrf.mxu1 }
 0x189   : > { %v1047_v34 = vpop.f32.mrf.mxu0  ;;  %v1086_v35 = vpop.f32.mrf.mxu1 }
 0x18b   : > { %v1559_v39 = vpop.f32.mrf.mxu1  ;;  %v1169_v40 = vpop.f32.mrf.mxu0 }
 0x18c   : > { %v1216_v56 = vadd.f32 %v1169_v40, %v1089_v52 }
 0x18d   : > { %v1171_v47 = vpop.f32.mrf.mxu0  ;;  %v1210_v48 = vpop.f32.mrf.mxu1 }
 0x18e   : > { %v1217_v60 = vadd.f32 %v1171_v47, %v1090_v54  ;;  %v1218_v61 = vadd.f32 %v1210_v48, %v1091_v55 }
 0x18f   : > { %v1173_v42 = vpop.f32.mrf.mxu0  ;;  %v1564_v43 = vpop.f32.mrf.mxu1 }
 0x191   : > { %v1174_v53 = vpop.f32.mrf.mxu0  ;;  %v1213_v6 = vpop.f32.mrf.mxu1 }
 0x193   : > { %v1565_v58 = vpop.f32.mrf.mxu1  ;;  %v1296_v59 = vpop.f32.mrf.mxu0 }
 0x194   : > { %v1343_v62 = vadd.f32 %v1296_v59, %v1216_v56 }
 0x195   : > { %v1298_v63 = vpop.f32.mrf.mxu0  ;;  %v1337_v0 = vpop.f32.mrf.mxu1 }
 0x196   : > { %v1354_v1 = vadd.f32 %v1352_v57, %v1343_v62  ;;  %v1344_v2 = vadd.f32 %v1298_v63, %v1217_v60  ;;  %v1345_v3 = vadd.f32 %v1337_v0, %v1218_v61 }
 0x197   : > { %v1300_v4 = vpop.f32.mrf.mxu0  ;;  %v1570_v5 = vpop.f32.mrf.mxu1 }
 0x198   : > { %1357 = vst [vmem:[%s206_s27] sm:$0xff] %v1354_v1  ;;  %v1355_v8 = vadd.f32 %v1352_v57, %v1344_v2  ;;  %v1356_v9 = vadd.f32 %v1352_v57, %v1345_v3 }
 0x199   : > { %v1301_v10 = vpop.f32.mrf.mxu0  ;;  %v1340_v11 = vpop.f32.mrf.mxu1 }
 0x19a   : > { %1358 = vst [vmem:[%s206_s27 + $0x8] sm:$0xff] %v1355_v8  ;;  %1359 = vst [vmem:[%s206_s27 + $0x10] sm:$0xff] %v1356_v9 }
 0x19b   : > { %v1571_v12 = vpop.f32.mrf.mxu1 }
 0x19c PF: > { %s13_s16 = sadd.s32 1, %s1667_s16   ;;  %s1877_s12 = smov %s1659_s14 }
 0x19d   : > { %p10_p7 = scmp.ge.s32.totalorder %s13_s16, 6   ;;  %s1878_s13 = smov %s1663_s15 }
 0x19e   : > { %s1879_s14 = smov %s1882_s17  ;;  %s1880_s15 = smov %s1886_s18 }
 0x19f   :  { %12 = sbr.rel (!%p10_p7) target bundleno = 3 (0x3), region = 64 }

</bundles_post_ra>
